<compile_context>
chip_gen: v6e
topology: v6e:2x2x1
jax: 0.10.0
libtpu: 0.0.40
codegen_flags: <defaults>
</compile_context>

<pallas_src>
import functools

import jax
import jax.numpy as jnp
from jax.experimental import pallas as pl
from jax.experimental.pallas import tpu as pltpu


def _round_up(n, m):
    return ((n + m - 1) // m) * m


def _pick_ff_tile(d_ff, ff_tile):
    """Largest multiple of 128 that divides d_ff and is <= ff_tile (else full d_ff)."""
    if d_ff <= ff_tile:
        return d_ff
    t = (ff_tile // 128) * 128
    while t >= 128:
        if d_ff % t == 0:
            return t
        t -= 128
    return d_ff


def _ffn_kernel(x_ref, gamma_ref, beta_ref, w1_ref, b1_ref, w2_ref, b2_ref,
                o_ref, xn_ref, acc_ref, *, eps):
    j = pl.program_id(1)

    @pl.when(j == 0)
    def _init():
        x = x_ref[...].astype(jnp.float32)
        inv_d = 1.0 / x.shape[-1]
        # Single-pass LayerNorm statistics (sum + sum-of-squares).
        s = jnp.sum(x, axis=-1, keepdims=True)
        sq = jnp.sum(x * x, axis=-1, keepdims=True)
        mean = s * inv_d
        var = sq * inv_d - mean * mean
        xn = (x - mean) * jax.lax.rsqrt(var + eps)
        xn = xn * gamma_ref[...].astype(jnp.float32) + beta_ref[...].astype(jnp.float32)
        # Cache bf16 MXU operand across d_ff tiles; keep f32 accumulator with the
        # residual and the w_2 bias folded in (added exactly once).
        xn_ref[...] = xn.astype(xn_ref.dtype)
        acc_ref[...] = x + b2_ref[...].astype(jnp.float32)

    # h = relu(xn @ w1[:, tile] + b1[tile])   (dropout_1 is identity in eval mode)
    h = jnp.dot(xn_ref[...], w1_ref[...], preferred_element_type=jnp.float32)
    h = jnp.maximum(h + b1_ref[...].astype(jnp.float32), 0.0)
    # TODO(synk): dropout_1 / dropout_2 omitted (eval-mode identity); use
    # pltpu.prng_seed + pltpu.prng_random_bits masking if training semantics are needed.

    # acc += h @ w2[tile, :]                  (dropout_2 is identity in eval mode)
    acc_ref[...] += jnp.dot(h.astype(w2_ref.dtype), w2_ref[...],
                            preferred_element_type=jnp.float32)

    @pl.when(j == pl.num_programs(1) - 1)
    def _finalize():
        o_ref[...] = acc_ref[...].astype(o_ref.dtype)


def positionwise_ffn(x, gamma, beta, w1, b1, w2, b2, *, eps=1e-6,
                     row_tile=256, ff_tile=2048, mxu_dtype=jnp.bfloat16,
                     vmem_limit_bytes=64 << 20):
    """x: (batch, seq, d_model) -> (batch, seq, d_model). Weights in JAX layout:
    w1: (d_model, d_ff), w2: (d_ff, d_model) (transpose of nn.Linear.weight)."""
    B, L, D = x.shape
    d_ff = w1.shape[1]
    rows = B * L

    # Effective tiles: row tile is a multiple of 8; ragged rows handled by padding.
    rt = _round_up(min(row_tile, _round_up(rows, 8)), 8)
    padded_rows = _round_up(rows, rt)
    tf = _pick_ff_tile(d_ff, ff_tile)
    n_rows = padded_rows // rt
    n_ff = d_ff // tf

    x2 = x.reshape(rows, D)
    if padded_rows != rows:
        x2 = jnp.pad(x2, ((0, padded_rows - rows), (0, 0)))

    # Element-wise params stay f32 (v5e VPU has no bf16 path); MXU weights in bf16.
    gamma2 = gamma.reshape(1, D).astype(jnp.float32)
    beta2 = beta.reshape(1, D).astype(jnp.float32)
    b1_2 = b1.reshape(1, d_ff).astype(jnp.float32)
    b2_2 = b2.reshape(1, D).astype(jnp.float32)
    w1m = w1.astype(mxu_dtype)
    w2m = w2.astype(mxu_dtype)

    x_bytes = jnp.dtype(x.dtype).itemsize
    w_bytes = jnp.dtype(mxu_dtype).itemsize
    cost = pl.CostEstimate(
        flops=4 * padded_rows * D * d_ff,                 # two matmuls
        transcendentals=padded_rows,                      # rsqrt per row
        bytes_accessed=(2 * padded_rows * D * x_bytes     # x in + out
                        + 2 * D * d_ff * w_bytes          # w1 + w2
                        + (3 * D + d_ff) * 4),            # gamma/beta/b2 + b1
    )

    try:
        cap = pltpu.get_tpu_info().vmem_capacity_bytes
        vmem_limit = min(vmem_limit_bytes, int(cap * 0.7))
    except Exception:
        vmem_limit = min(vmem_limit_bytes, 40 << 20)      # safe on v5e/v6e/v7x

    def build(single_buffer_params):
        def const_spec(shape, index_map):
            # Blocks whose index never changes: single-buffer to halve VMEM residency.
            if single_buffer_params:
                return pl.BlockSpec(shape, index_map, pipeline_mode=pl.Buffered(1))
            return pl.BlockSpec(shape, index_map)

        # Weight tiles are grid-constant only when d_ff is untiled.
        w_spec = const_spec if n_ff == 1 else pl.BlockSpec

        in_specs = [
            pl.BlockSpec((rt, D), lambda i, j: (i, 0)),    # x row tile
            const_spec((1, D), lambda i, j: (0, 0)),       # gamma
            const_spec((1, D), lambda i, j: (0, 0)),       # beta
            w_spec((D, tf), lambda i, j: (0, j)),          # w1 tile (bf16)
            w_spec((1, tf), lambda i, j: (0, j)),          # b1 tile
            w_spec((tf, D), lambda i, j: (j, 0)),          # w2 tile (bf16)
            const_spec((1, D), lambda i, j: (0, 0)),       # b2
        ]
        return pl.pallas_call(
            functools.partial(_ffn_kernel, eps=eps),
            out_shape=jax.ShapeDtypeStruct((padded_rows, D), x.dtype),
            grid_spec=pltpu.PrefetchScalarGridSpec(
                num_scalar_prefetch=0,
                grid=(n_rows, n_ff),                       # d_ff reduction innermost
                in_specs=in_specs,
                out_specs=pl.BlockSpec((rt, D), lambda i, j: (i, 0)),
                scratch_shapes=[
                    pltpu.VMEM((rt, D), mxu_dtype),        # cached layer-normed xn
                    pltpu.VMEM((rt, D), jnp.float32),      # f32 output accumulator
                ],
            ),
            compiler_params=pltpu.CompilerParams(
                dimension_semantics=("parallel", "arbitrary"),
                vmem_limit_bytes=vmem_limit,
            ),
            cost_estimate=cost,
        )

    args = (x2, gamma2, beta2, w1m, b1_2, w2m, b2_2)
    try:
        out2 = build(single_buffer_params=True)(*args)
    except Exception:
        # pl.Buffered(1) not accepted by this jax build -> default double buffering.
        out2 = build(single_buffer_params=False)(*args)

    if padded_rows != rows:
        out2 = out2[:rows]
    return out2.reshape(B, L, D)


def reference_ffn(x, gamma, beta, w1, b1, w2, b2, eps=1e-6):
    xf = x.astype(jnp.float32)
    mean = jnp.mean(xf, axis=-1, keepdims=True)
    var = jnp.mean((xf - mean) ** 2, axis=-1, keepdims=True)
    xn = (xf - mean) * jax.lax.rsqrt(var + eps) * gamma + beta
    h = jnp.maximum(xn @ w1 + b1, 0.0)
    return (h @ w2 + b2 + xf).astype(x.dtype)


if __name__ == "__main__":
    # Small shapes consistent with forward: (batch, input_len, d_model).
    # Chosen so the demo exercises multiple row tiles, d_ff tiling, and row padding.
    batch, seq, d_model, d_ff = 2, 40, 32, 256

    key = jax.random.PRNGKey(0)
    kx, kw1, kb1, kw2, kb2 = jax.random.split(key, 5)

    x = jax.random.normal(kx, (batch, seq, d_model), dtype=jnp.float32)
    w1 = jax.random.normal(kw1, (d_model, d_ff), dtype=jnp.float32) * 0.05
    b1 = jax.random.normal(kb1, (d_ff,), dtype=jnp.float32) * 0.01
    w2 = jax.random.normal(kw2, (d_ff, d_model), dtype=jnp.float32) * 0.05
    b2 = jax.random.normal(kb2, (d_model,), dtype=jnp.float32) * 0.01
    gamma = jnp.ones((d_model,), dtype=jnp.float32)
    beta = jnp.zeros((d_model,), dtype=jnp.float32)

    out = positionwise_ffn(x, gamma, beta, w1, b1, w2, b2,
                           row_tile=32, ff_tile=128)
    out = jax.block_until_ready(out)

    ref = reference_ffn(x, gamma, beta, w1, b1, w2, b2)
    assert out.shape == x.shape and out.dtype == x.dtype
    # Tolerance covers bf16 rounding of the MXU operands (f32 accumulation).
    assert jnp.allclose(out, ref, atol=2e-2, rtol=2e-2), "mismatch vs reference"

    print("KERNEL_OK")
</pallas_src>

<mosaic_0001>
module attributes {stable_mosaic.version = 11 : i64} {
  func.func @_ffn_kernel(%arg0: i32, %arg1: i32, %arg2: memref<32x32xf32, #tpu.memory_space<vmem>>, %arg3: memref<1x32xf32, #tpu.memory_space<vmem>>, %arg4: memref<1x32xf32, #tpu.memory_space<vmem>>, %arg5: memref<32x128xbf16, #tpu.memory_space<vmem>>, %arg6: memref<1x128xf32, #tpu.memory_space<vmem>>, %arg7: memref<128x32xbf16, #tpu.memory_space<vmem>>, %arg8: memref<1x32xf32, #tpu.memory_space<vmem>>, %arg9: memref<32x32xf32, #tpu.memory_space<vmem>>, %arg10: memref<32x32xbf16, #tpu.memory_space<vmem>>, %arg11: memref<32x32xf32, #tpu.memory_space<vmem>>) attributes {dimension_semantics = [#tpu.dimension_semantics<parallel>, #tpu.dimension_semantics<arbitrary>], iteration_bounds = array<i64: 3, 2>, scalar_prefetch = 0 : i64, scratch_operands = 2 : i64, tpu.core_type = #tpu.core_type<tc>, window_params = [{transform_indices = @transform_0, window_bounds = array<i64: 32, 32>}, {pipeline_mode = #tpu.pipeline_mode<synchronous>, transform_indices = @transform_1, window_bounds = array<i64: 1, 32>}, {pipeline_mode = #tpu.pipeline_mode<synchronous>, transform_indices = @transform_2, window_bounds = array<i64: 1, 32>}, {transform_indices = @transform_3, window_bounds = array<i64: 32, 128>}, {transform_indices = @transform_4, window_bounds = array<i64: 1, 128>}, {transform_indices = @transform_5, window_bounds = array<i64: 128, 32>}, {pipeline_mode = #tpu.pipeline_mode<synchronous>, transform_indices = @transform_6, window_bounds = array<i64: 1, 32>}, {transform_indices = @transform_7, window_bounds = array<i64: 32, 32>}]} {
    %c0_i32 = arith.constant 0 : i32
    %0 = arith.cmpi eq, %arg1, %c0_i32 : i32
    %1 = arith.extui %0 : i1 to i32
    %c0_i32_0 = arith.constant 0 : i32
    %2 = arith.cmpi ne, %1, %c0_i32_0 : i32
    scf.if %2 {
      %c0_15 = arith.constant 0 : index
      %c0_16 = arith.constant 0 : index
      %20 = vector.load %arg2[%c0_15, %c0_16] : memref<32x32xf32, #tpu.memory_space<vmem>>, vector<32x32xf32>
      %cst_17 = arith.constant dense<0.000000e+00> : vector<32xf32>
      %21 = vector.multi_reduction <add>, %20, %cst_17 [1] : vector<32x32xf32> to vector<32xf32>
      %22 = vector.shape_cast %21 : vector<32xf32> to vector<32x1xf32>
      %23 = arith.mulf %20, %20 : vector<32x32xf32>
      %cst_18 = arith.constant dense<0.000000e+00> : vector<32xf32>
      %24 = vector.multi_reduction <add>, %23, %cst_18 [1] : vector<32x32xf32> to vector<32xf32>
      %25 = vector.shape_cast %24 : vector<32xf32> to vector<32x1xf32>
      %cst_19 = arith.constant 3.125000e-02 : f32
      %26 = vector.broadcast %cst_19 : f32 to vector<32x1xf32>
      %27 = arith.mulf %22, %26 : vector<32x1xf32>
      %cst_20 = arith.constant 3.125000e-02 : f32
      %28 = vector.broadcast %cst_20 : f32 to vector<32x1xf32>
      %29 = arith.mulf %25, %28 : vector<32x1xf32>
      %30 = arith.mulf %27, %27 : vector<32x1xf32>
      %31 = arith.subf %29, %30 : vector<32x1xf32>
      %32 = vector.broadcast %27 : vector<32x1xf32> to vector<32x32xf32>
      %33 = arith.subf %20, %32 : vector<32x32xf32>
      %cst_21 = arith.constant 9.99999997E-7 : f32
      %34 = vector.broadcast %cst_21 : f32 to vector<32x1xf32>
      %35 = arith.addf %31, %34 : vector<32x1xf32>
      %36 = math.rsqrt %35 : vector<32x1xf32>
      %37 = vector.broadcast %36 : vector<32x1xf32> to vector<32x32xf32>
      %38 = arith.mulf %33, %37 : vector<32x32xf32>
      %c0_22 = arith.constant 0 : index
      %c0_23 = arith.constant 0 : index
      %39 = vector.load %arg3[%c0_22, %c0_23] : memref<1x32xf32, #tpu.memory_space<vmem>>, vector<1x32xf32>
      %40 = vector.broadcast %39 : vector<1x32xf32> to vector<32x32xf32>
      %41 = arith.mulf %38, %40 : vector<32x32xf32>
      %c0_24 = arith.constant 0 : index
      %c0_25 = arith.constant 0 : index
      %42 = vector.load %arg4[%c0_24, %c0_25] : memref<1x32xf32, #tpu.memory_space<vmem>>, vector<1x32xf32>
      %43 = vector.broadcast %42 : vector<1x32xf32> to vector<32x32xf32>
      %44 = arith.addf %41, %43 : vector<32x32xf32>
      %45 = arith.truncf %44 : vector<32x32xf32> to vector<32x32xbf16>
      %c0_26 = arith.constant 0 : index
      %c0_27 = arith.constant 0 : index
      %46 = vector.load %arg10[%c0_26, %c0_27] : memref<32x32xbf16, #tpu.memory_space<vmem>>, vector<32x32xbf16>
      tpu.vector_store %arg10[%c0_26, %c0_27], %45 {strides = array<i32>} : memref<32x32xbf16, #tpu.memory_space<vmem>>, vector<32x32xbf16>,
      %c0_28 = arith.constant 0 : index
      %c0_29 = arith.constant 0 : index
      %47 = vector.load %arg8[%c0_28, %c0_29] : memref<1x32xf32, #tpu.memory_space<vmem>>, vector<1x32xf32>
      %48 = vector.broadcast %47 : vector<1x32xf32> to vector<32x32xf32>
      %49 = arith.addf %20, %48 : vector<32x32xf32>
      %c0_30 = arith.constant 0 : index
      %c0_31 = arith.constant 0 : index
      %50 = vector.load %arg11[%c0_30, %c0_31] : memref<32x32xf32, #tpu.memory_space<vmem>>, vector<32x32xf32>
      tpu.vector_store %arg11[%c0_30, %c0_31], %49 {strides = array<i32>} : memref<32x32xf32, #tpu.memory_space<vmem>>, vector<32x32xf32>,
    } else {
    }
    %c0 = arith.constant 0 : index
    %c0_1 = arith.constant 0 : index
    %3 = vector.load %arg10[%c0, %c0_1] : memref<32x32xbf16, #tpu.memory_space<vmem>>, vector<32x32xbf16>
    %c0_2 = arith.constant 0 : index
    %c0_3 = arith.constant 0 : index
    %4 = vector.load %arg5[%c0_2, %c0_3] : memref<32x128xbf16, #tpu.memory_space<vmem>>, vector<32x128xbf16>
    %cst = arith.constant dense<0.000000e+00> : vector<32x128xf32>
    %5 = tpu.matmul %3, %4, %cst {dimension_numbers = #tpu.dot_dimension_numbers<[1], [0], [0], [1], [0, 0, 1, 1], [], []>} : vector<32x32xbf16>, vector<32x128xbf16>, vector<32x128xf32> -> vector<32x128xf32>
    %c0_4 = arith.constant 0 : index
    %c0_5 = arith.constant 0 : index
    %6 = vector.load %arg6[%c0_4, %c0_5] : memref<1x128xf32, #tpu.memory_space<vmem>>, vector<1x128xf32>
    %7 = vector.broadcast %6 : vector<1x128xf32> to vector<32x128xf32>
    %8 = arith.addf %5, %7 : vector<32x128xf32>
    %cst_6 = arith.constant 0.000000e+00 : f32
    %9 = vector.broadcast %cst_6 : f32 to vector<32x128xf32>
    %10 = arith.maximumf %8, %9 : vector<32x128xf32>
    %c0_7 = arith.constant 0 : index
    %c0_8 = arith.constant 0 : index
    %11 = vector.load %arg11[%c0_7, %c0_8] : memref<32x32xf32, #tpu.memory_space<vmem>>, vector<32x32xf32>
    %12 = arith.truncf %10 : vector<32x128xf32> to vector<32x128xbf16>
    %c0_9 = arith.constant 0 : index
    %c0_10 = arith.constant 0 : index
    %13 = vector.load %arg7[%c0_9, %c0_10] : memref<128x32xbf16, #tpu.memory_space<vmem>>, vector<128x32xbf16>
    %cst_11 = arith.constant dense<0.000000e+00> : vector<32x32xf32>
    %14 = tpu.matmul %12, %13, %cst_11 {dimension_numbers = #tpu.dot_dimension_numbers<[1], [0], [0], [1], [0, 0, 1, 1], [], []>} : vector<32x128xbf16>, vector<128x32xbf16>, vector<32x32xf32> -> vector<32x32xf32>
    %15 = arith.addf %11, %14 : vector<32x32xf32>
    %c0_12 = arith.constant 0 : index
    %c0_13 = arith.constant 0 : index
    %16 = vector.load %arg11[%c0_12, %c0_13] : memref<32x32xf32, #tpu.memory_space<vmem>>, vector<32x32xf32>
    tpu.vector_store %arg11[%c0_12, %c0_13], %15 {strides = array<i32>} : memref<32x32xf32, #tpu.memory_space<vmem>>, vector<32x32xf32>,
    %c1_i32 = arith.constant 1 : i32
    %17 = arith.cmpi eq, %arg1, %c1_i32 : i32
    %18 = arith.extui %17 : i1 to i32
    %c0_i32_14 = arith.constant 0 : i32
    %19 = arith.cmpi ne, %18, %c0_i32_14 : i32
    scf.if %19 {
      %c0_15 = arith.constant 0 : index
      %c0_16 = arith.constant 0 : index
      %20 = vector.load %arg11[%c0_15, %c0_16] : memref<32x32xf32, #tpu.memory_space<vmem>>, vector<32x32xf32>
      %c0_17 = arith.constant 0 : index
      %c0_18 = arith.constant 0 : index
      %21 = vector.load %arg9[%c0_17, %c0_18] : memref<32x32xf32, #tpu.memory_space<vmem>>, vector<32x32xf32>
      tpu.vector_store %arg9[%c0_17, %c0_18], %20 {strides = array<i32>} : memref<32x32xf32, #tpu.memory_space<vmem>>, vector<32x32xf32>,
    } else {
    }
    return
  }
  func.func @transform_0(%arg0: i32, %arg1: i32) -> (i32, i32) {
    %c0_i32 = arith.constant 0 : i32
    %c0_i32_0 = arith.constant 0 : i32
    return %arg0, %c0_i32 : i32, i32
  }
  func.func @transform_1(%arg0: i32, %arg1: i32) -> (i32, i32) {
    %c0_i32 = arith.constant 0 : i32
    %c0_i32_0 = arith.constant 0 : i32
    %c0_i32_1 = arith.constant 0 : i32
    return %c0_i32, %c0_i32_0 : i32, i32
  }
  func.func @transform_2(%arg0: i32, %arg1: i32) -> (i32, i32) {
    %c0_i32 = arith.constant 0 : i32
    %c0_i32_0 = arith.constant 0 : i32
    %c0_i32_1 = arith.constant 0 : i32
    return %c0_i32, %c0_i32_0 : i32, i32
  }
  func.func @transform_3(%arg0: i32, %arg1: i32) -> (i32, i32) {
    %c0_i32 = arith.constant 0 : i32
    %c0_i32_0 = arith.constant 0 : i32
    return %c0_i32, %arg1 : i32, i32
  }
  func.func @transform_4(%arg0: i32, %arg1: i32) -> (i32, i32) {
    %c0_i32 = arith.constant 0 : i32
    %c0_i32_0 = arith.constant 0 : i32
    return %c0_i32, %arg1 : i32, i32
  }
  func.func @transform_5(%arg0: i32, %arg1: i32) -> (i32, i32) {
    %c0_i32 = arith.constant 0 : i32
    %c0_i32_0 = arith.constant 0 : i32
    return %arg1, %c0_i32 : i32, i32
  }
  func.func @transform_6(%arg0: i32, %arg1: i32) -> (i32, i32) {
    %c0_i32 = arith.constant 0 : i32
    %c0_i32_0 = arith.constant 0 : i32
    %c0_i32_1 = arith.constant 0 : i32
    return %c0_i32, %c0_i32_0 : i32, i32
  }
  func.func @transform_7(%arg0: i32, %arg1: i32) -> (i32, i32) {
    %c0_i32 = arith.constant 0 : i32
    %c0_i32_0 = arith.constant 0 : i32
    return %arg0, %c0_i32 : i32, i32
  }
}

module attributes {stable_mosaic.version = 11 : i64} {
  func.func @_ffn_kernel(%arg0: i32, %arg1: i32, %arg2: memref<32x32xf32, #tpu.memory_space<vmem>>, %arg3: memref<1x32xf32, #tpu.memory_space<vmem>>, %arg4: memref<1x32xf32, #tpu.memory_space<vmem>>, %arg5: memref<32x128xbf16, #tpu.memory_space<vmem>>, %arg6: memref<1x128xf32, #tpu.memory_space<vmem>>, %arg7: memref<128x32xbf16, #tpu.memory_space<vmem>>, %arg8: memref<1x32xf32, #tpu.memory_space<vmem>>, %arg9: memref<32x32xf32, #tpu.memory_space<vmem>>, %arg10: memref<32x32xbf16, #tpu.memory_space<vmem>>, %arg11: memref<32x32xf32, #tpu.memory_space<vmem>>) attributes {dimension_semantics = [#tpu.dimension_semantics<parallel>, #tpu.dimension_semantics<arbitrary>], iteration_bounds = array<i64: 3, 2>, scalar_prefetch = 0 : i64, scratch_operands = 2 : i64, tpu.core_type = #tpu.core_type<tc>, window_params = [{transform_indices = @transform_0, window_bounds = array<i64: 32, 32>}, {pipeline_mode = #tpu.pipeline_mode<synchronous>, transform_indices = @transform_1, window_bounds = array<i64: 1, 32>}, {pipeline_mode = #tpu.pipeline_mode<synchronous>, transform_indices = @transform_2, window_bounds = array<i64: 1, 32>}, {transform_indices = @transform_3, window_bounds = array<i64: 32, 128>}, {transform_indices = @transform_4, window_bounds = array<i64: 1, 128>}, {transform_indices = @transform_5, window_bounds = array<i64: 128, 32>}, {pipeline_mode = #tpu.pipeline_mode<synchronous>, transform_indices = @transform_6, window_bounds = array<i64: 1, 32>}, {transform_indices = @transform_7, window_bounds = array<i64: 32, 32>}]} {
    %c0_i32 = arith.constant 0 : i32
    %0 = arith.cmpi eq, %arg1, %c0_i32 : i32
    %1 = arith.extui %0 : i1 to i32
    %c0_i32_0 = arith.constant 0 : i32
    %2 = arith.cmpi ne, %1, %c0_i32_0 : i32
    scf.if %2 {
      %c0_15 = arith.constant 0 : index
      %c0_16 = arith.constant 0 : index
      %20 = vector.load %arg2[%c0_15, %c0_16] : memref<32x32xf32, #tpu.memory_space<vmem>>, vector<32x32xf32>
      %cst_17 = arith.constant dense<0.000000e+00> : vector<32xf32>
      %21 = vector.multi_reduction <add>, %20, %cst_17 [1] : vector<32x32xf32> to vector<32xf32>
      %22 = vector.shape_cast %21 : vector<32xf32> to vector<32x1xf32>
      %23 = arith.mulf %20, %20 : vector<32x32xf32>
      %cst_18 = arith.constant dense<0.000000e+00> : vector<32xf32>
      %24 = vector.multi_reduction <add>, %23, %cst_18 [1] : vector<32x32xf32> to vector<32xf32>
      %25 = vector.shape_cast %24 : vector<32xf32> to vector<32x1xf32>
      %cst_19 = arith.constant 3.125000e-02 : f32
      %26 = vector.broadcast %cst_19 : f32 to vector<32x1xf32>
      %27 = arith.mulf %22, %26 : vector<32x1xf32>
      %cst_20 = arith.constant 3.125000e-02 : f32
      %28 = vector.broadcast %cst_20 : f32 to vector<32x1xf32>
      %29 = arith.mulf %25, %28 : vector<32x1xf32>
      %30 = arith.mulf %27, %27 : vector<32x1xf32>
      %31 = arith.subf %29, %30 : vector<32x1xf32>
      %32 = vector.broadcast %27 : vector<32x1xf32> to vector<32x32xf32>
      %33 = arith.subf %20, %32 : vector<32x32xf32>
      %cst_21 = arith.constant 9.99999997E-7 : f32
      %34 = vector.broadcast %cst_21 : f32 to vector<32x1xf32>
      %35 = arith.addf %31, %34 : vector<32x1xf32>
      %36 = math.rsqrt %35 : vector<32x1xf32>
      %37 = vector.broadcast %36 : vector<32x1xf32> to vector<32x32xf32>
      %38 = arith.mulf %33, %37 : vector<32x32xf32>
      %c0_22 = arith.constant 0 : index
      %c0_23 = arith.constant 0 : index
      %39 = vector.load %arg3[%c0_22, %c0_23] : memref<1x32xf32, #tpu.memory_space<vmem>>, vector<1x32xf32>
      %40 = vector.broadcast %39 : vector<1x32xf32> to vector<32x32xf32>
      %41 = arith.mulf %38, %40 : vector<32x32xf32>
      %c0_24 = arith.constant 0 : index
      %c0_25 = arith.constant 0 : index
      %42 = vector.load %arg4[%c0_24, %c0_25] : memref<1x32xf32, #tpu.memory_space<vmem>>, vector<1x32xf32>
      %43 = vector.broadcast %42 : vector<1x32xf32> to vector<32x32xf32>
      %44 = arith.addf %41, %43 : vector<32x32xf32>
      %45 = arith.truncf %44 : vector<32x32xf32> to vector<32x32xbf16>
      %c0_26 = arith.constant 0 : index
      %c0_27 = arith.constant 0 : index
      %46 = vector.load %arg10[%c0_26, %c0_27] : memref<32x32xbf16, #tpu.memory_space<vmem>>, vector<32x32xbf16>
      tpu.vector_store %arg10[%c0_26, %c0_27], %45 {strides = array<i32>} : memref<32x32xbf16, #tpu.memory_space<vmem>>, vector<32x32xbf16>,
      %c0_28 = arith.constant 0 : index
      %c0_29 = arith.constant 0 : index
      %47 = vector.load %arg8[%c0_28, %c0_29] : memref<1x32xf32, #tpu.memory_space<vmem>>, vector<1x32xf32>
      %48 = vector.broadcast %47 : vector<1x32xf32> to vector<32x32xf32>
      %49 = arith.addf %20, %48 : vector<32x32xf32>
      %c0_30 = arith.constant 0 : index
      %c0_31 = arith.constant 0 : index
      %50 = vector.load %arg11[%c0_30, %c0_31] : memref<32x32xf32, #tpu.memory_space<vmem>>, vector<32x32xf32>
      tpu.vector_store %arg11[%c0_30, %c0_31], %49 {strides = array<i32>} : memref<32x32xf32, #tpu.memory_space<vmem>>, vector<32x32xf32>,
    } else {
    }
    %c0 = arith.constant 0 : index
    %c0_1 = arith.constant 0 : index
    %3 = vector.load %arg10[%c0, %c0_1] : memref<32x32xbf16, #tpu.memory_space<vmem>>, vector<32x32xbf16>
    %c0_2 = arith.constant 0 : index
    %c0_3 = arith.constant 0 : index
    %4 = vector.load %arg5[%c0_2, %c0_3] : memref<32x128xbf16, #tpu.memory_space<vmem>>, vector<32x128xbf16>
    %cst = arith.constant dense<0.000000e+00> : vector<32x128xf32>
    %5 = tpu.matmul %3, %4, %cst {dimension_numbers = #tpu.dot_dimension_numbers<[1], [0], [0], [1], [0, 0, 1, 1], [], []>} : vector<32x32xbf16>, vector<32x128xbf16>, vector<32x128xf32> -> vector<32x128xf32>
    %c0_4 = arith.constant 0 : index
    %c0_5 = arith.constant 0 : index
    %6 = vector.load %arg6[%c0_4, %c0_5] : memref<1x128xf32, #tpu.memory_space<vmem>>, vector<1x128xf32>
    %7 = vector.broadcast %6 : vector<1x128xf32> to vector<32x128xf32>
    %8 = arith.addf %5, %7 : vector<32x128xf32>
    %cst_6 = arith.constant 0.000000e+00 : f32
    %9 = vector.broadcast %cst_6 : f32 to vector<32x128xf32>
    %10 = arith.maximumf %8, %9 : vector<32x128xf32>
    %c0_7 = arith.constant 0 : index
    %c0_8 = arith.constant 0 : index
    %11 = vector.load %arg11[%c0_7, %c0_8] : memref<32x32xf32, #tpu.memory_space<vmem>>, vector<32x32xf32>
    %12 = arith.truncf %10 : vector<32x128xf32> to vector<32x128xbf16>
    %c0_9 = arith.constant 0 : index
    %c0_10 = arith.constant 0 : index
    %13 = vector.load %arg7[%c0_9, %c0_10] : memref<128x32xbf16, #tpu.memory_space<vmem>>, vector<128x32xbf16>
    %cst_11 = arith.constant dense<0.000000e+00> : vector<32x32xf32>
    %14 = tpu.matmul %12, %13, %cst_11 {dimension_numbers = #tpu.dot_dimension_numbers<[1], [0], [0], [1], [0, 0, 1, 1], [], []>} : vector<32x128xbf16>, vector<128x32xbf16>, vector<32x32xf32> -> vector<32x32xf32>
    %15 = arith.addf %11, %14 : vector<32x32xf32>
    %c0_12 = arith.constant 0 : index
    %c0_13 = arith.constant 0 : index
    %16 = vector.load %arg11[%c0_12, %c0_13] : memref<32x32xf32, #tpu.memory_space<vmem>>, vector<32x32xf32>
    tpu.vector_store %arg11[%c0_12, %c0_13], %15 {strides = array<i32>} : memref<32x32xf32, #tpu.memory_space<vmem>>, vector<32x32xf32>,
    %c1_i32 = arith.constant 1 : i32
    %17 = arith.cmpi eq, %arg1, %c1_i32 : i32
    %18 = arith.extui %17 : i1 to i32
    %c0_i32_14 = arith.constant 0 : i32
    %19 = arith.cmpi ne, %18, %c0_i32_14 : i32
    scf.if %19 {
      %c0_15 = arith.constant 0 : index
      %c0_16 = arith.constant 0 : index
      %20 = vector.load %arg11[%c0_15, %c0_16] : memref<32x32xf32, #tpu.memory_space<vmem>>, vector<32x32xf32>
      %c0_17 = arith.constant 0 : index
      %c0_18 = arith.constant 0 : index
      %21 = vector.load %arg9[%c0_17, %c0_18] : memref<32x32xf32, #tpu.memory_space<vmem>>, vector<32x32xf32>
      tpu.vector_store %arg9[%c0_17, %c0_18], %20 {strides = array<i32>} : memref<32x32xf32, #tpu.memory_space<vmem>>, vector<32x32xf32>,
    } else {
    }
    return
  }
  func.func @transform_0(%arg0: i32, %arg1: i32) -> (i32, i32) {
    %c0_i32 = arith.constant 0 : i32
    %c0_i32_0 = arith.constant 0 : i32
    return %arg0, %c0_i32 : i32, i32
  }
  func.func @transform_1(%arg0: i32, %arg1: i32) -> (i32, i32) {
    %c0_i32 = arith.constant 0 : i32
    %c0_i32_0 = arith.constant 0 : i32
    %c0_i32_1 = arith.constant 0 : i32
    return %c0_i32, %c0_i32_0 : i32, i32
  }
  func.func @transform_2(%arg0: i32, %arg1: i32) -> (i32, i32) {
    %c0_i32 = arith.constant 0 : i32
    %c0_i32_0 = arith.constant 0 : i32
    %c0_i32_1 = arith.constant 0 : i32
    return %c0_i32, %c0_i32_0 : i32, i32
  }
  func.func @transform_3(%arg0: i32, %arg1: i32) -> (i32, i32) {
    %c0_i32 = arith.constant 0 : i32
    %c0_i32_0 = arith.constant 0 : i32
    return %c0_i32, %arg1 : i32, i32
  }
  func.func @transform_4(%arg0: i32, %arg1: i32) -> (i32, i32) {
    %c0_i32 = arith.constant 0 : i32
    %c0_i32_0 = arith.constant 0 : i32
    return %c0_i32, %arg1 : i32, i32
  }
  func.func @transform_5(%arg0: i32, %arg1: i32) -> (i32, i32) {
    %c0_i32 = arith.constant 0 : i32
    %c0_i32_0 = arith.constant 0 : i32
    return %arg1, %c0_i32 : i32, i32
  }
  func.func @transform_6(%arg0: i32, %arg1: i32) -> (i32, i32) {
    %c0_i32 = arith.constant 0 : i32
    %c0_i32_0 = arith.constant 0 : i32
    %c0_i32_1 = arith.constant 0 : i32
    return %c0_i32, %c0_i32_0 : i32, i32
  }
  func.func @transform_7(%arg0: i32, %arg1: i32) -> (i32, i32) {
    %c0_i32 = arith.constant 0 : i32
    %c0_i32_0 = arith.constant 0 : i32
    return %arg0, %c0_i32 : i32, i32
  }
}

</mosaic_0001>

<bundles_post_ra>
// kernel: tpu_custom_call.1
= control target key start
LH: loop header
LB: loop body
LE: loop exit
PB: predicated region body
PF: predicated region fallthrough
CT: control target
= control target key end

     0   :  { %s1323_s0 = inlined_call_operand.vmem [shape: f32[96,32], index: 0, kind: input, shape index: {}]   ;;  %s1324_s1 = inlined_call_operand.vmem [shape: f32[1,32], index: 1, kind: input, shape index: {}]   ;;  %s1325_s2 = inlined_call_operand.vmem [shape: f32[1,32], index: 2, kind: input, shape index: {}]   ;;  %s1326_s3 = inlined_call_operand.vmem [shape: bf16[32,256], index: 3, kind: input, shape index: {}]   ;;  %s1327_s4 = inlined_call_operand.vmem [shape: f32[1,256], index: 4, kind: input, shape index: {}]   ;;  %s1328_s5 = inlined_call_operand.vmem [shape: bf16[256,32], index: 5, kind: input, shape index: {}]   ;;  %s1329_s6 = inlined_call_operand.vmem [shape: f32[1,32], index: 6, kind: input, shape index: {}]   ;;  %s1330_s7 = inlined_call_operand.vmem [shape: f32[96,32], index: 7, kind: output, shape index: {}]  }
   0x1   :  { %1332 = sst [smem:[#allocation7_spill]] %s1326_s3 }
   0x2   :  { %s1134_s24 = smov 0   ;;  %s1136_s25 = smov 0  }
   0x3   :  { %s1138_s26 = smov 0   ;;  %s1140_s27 = smov 0  }
   0x4   :  { %s1142_s28 = smov 0   ;;  %s1144_s29 = smov 0  }
   0x5   :  { %s1146_s30 = smov 0  }
   0x6 LB: > { %s26_s8 = sadd.s32 1, %s1084_s28  ;;  %s29_s9 = sadd.s32 1, %s1088_s29  ;;  %s1092_s30 = sphi %s1146_s30, %s17_s30   ;;  %s1088_s29 = sphi %s1144_s29, %s1343_s29   ;;  %s1084_s28 = sphi %s1142_s28, %s1342_s28   ;;  %s1080_s27 = sphi %s1140_s27, %s1341_s27   ;;  %s1076_s26 = sphi %s1138_s26, %s1340_s26   ;;  %s1072_s25 = sphi %s1136_s25, %s1339_s25   ;;  %s1068_s24 = sphi %s1134_s24, %s1338_s24  }
   0x7   : > { %p27_p0 = scmp.ge.s32.totalorder %s26_s8, 2  ;;  %s104_s10 = sadd.s32 1, %s1072_s25 }
   0x8   : > { %p111_p1 = scmp.ne.s32.totalorder %s1072_s25, %s1068_s24  ;;  %p112_p2 = scmp.eq.s32.totalorder %s1092_s30, 0 }
   0x9   : > { %s1345_s8 = smov (%p27_p0, %s26_s8), 0  ;;  %s1347_s9 = smov (!%p27_p0, %s29_s9), %s1088_s29 }
   0xa   : > { %1333 = sst [smem:[#allocation5_spill]] %s1345_s8  ;;  %s101_s11 = ssub.s32 %s1084_s28, %s1345_s8 }
   0xb   : > { %p113_p3 = por %p112_p2, %p111_p1  ;;  %p31_p4 = scmp.ge.s32.totalorder %s1347_s9, 3 }
   0xc   : > { %p102_p5 = scmp.eq.s32.totalorder %s101_s11, 0  ;;  %p879_p6 = scmp.ge.s32.totalorder %s1092_s30, 6 }
   0xd   : > { %s1349_s9 = smov (%p31_p4, %s1347_s9), 0 }
   0xe   : > { %1334 = sst [smem:[#allocation6_spill]] %s1349_s9  ;;  %245 = sbr.rel (%p879_p6) target bundleno = 31 (0x1f), region = 28 }
   0xf   : > { %s1183_s12 = scalar_select %p102_p5, %s1072_s25, %s104_s10  }
  0x13   : > { %257 = sbr.rel (!%p113_p3) target bundleno = 31 (0x1f), region = 36  ;;  %s259_s13 = sand.u32 (%p113_p3), 1, %s1072_s25  }
  0x14   : > { %s881_s14 = sshll.u32 (%p113_p3), %s1084_s28, 2  ;;  %s880_s15 = sshll.u32 (%p113_p3), %s259_s13, 4 }
  0x15   : > { %s1335_s3 = sld [smem:[#allocation7_spill]] (%p113_p3)  ;;  %s261_s19 = scalar_lea.vmem (%p113_p3), [#allocation4], %s880_s15 }
  0x1b   : > { %s263_s18 = scalar_lea.vmem %s1335_s3, %s881_s14 }
  0x1c   : > { %v280_v0 = vld [vmem:[%s263_s18] sm:$0xf]  ;;  %v282_v1 = vld [vmem:[%s263_s18 + $0x8] sm:$0xf]  ;;  %v284_v2 = vld [vmem:[%s263_s18 + $0x10] sm:$0xf] }
  0x1d   : > { %281 = vst [vmem:[%s261_s19] sm:$0xf] %v280_v0  ;;  %283 = vst [vmem:[%s261_s19 + $0x4] sm:$0xf] %v282_v1  ;;  %v286_v3 = vld [vmem:[%s263_s18 + $0x18] sm:$0xf] }
  0x1e   : > { %285 = vst [vmem:[%s261_s19 + $0x8] sm:$0xf] %v284_v2  ;;  %287 = vst [vmem:[%s261_s19 + $0xc] sm:$0xf] %v286_v3 }
  0x1f PF: > { %p882_p7 = scmp.ge.s32.totalorder %s1092_s30, 1  ;;  %p333_p8 = scmp.lt.s32.totalorder %s1092_s30, 7 }
  0x21   : > { %p334_p9 = pnand %p882_p7, %p333_p8 }
  0x22   : > { %s340_s20 = sand.u32 (!%p334_p9), 1, %s1068_s24   ;;  %s884_s21 = sshll.u32 (!%p334_p9), %s1080_s27, 2 }
  0x23   : > { %337 = sbr.rel (%p334_p9) target bundleno = 657 (0x291), region = 85  ;;  %s1195_s22 = sshll.u32 (!%p334_p9), %s340_s20, 4 }
  0x24   : > { %p385_p10 = scmp.lt.s32.totalorder (!%p334_p9), %s884_s21, 11  ;;  %p390_p11 = scmp.lt.s32.totalorder (!%p334_p9), %s1076_s26, 1 }
  0x25   : > { %s886_s11 = sshll.u32 (!%p334_p9), %s1076_s26, 4  ;;  %s342_s8 = scalar_lea.vmem (!%p334_p9), [#allocation4], %s1195_s22 }
  0x26   : > { %p394_p12 = scmp.lt.s32.totalorder (!%p334_p9), %s886_s11, 31  ;;  %p890_p13 = scmp.ne.s32.totalorder (!%p334_p9), %s1076_s26, 0 }
  0x28   : > { %s1351_s21 = smov (!%p385_p10, %s884_s21), 11  ;;  %s1353_s11 = smov (!%p394_p12, %s886_s11), 31 }
  0x29   : > { %s1199_s23 = scalar_select %p390_p11, %s1076_s26, 1 }
  0x2a   : > { %s885_s10 = sshll.u32 %s1351_s21, 3  ;;  %s887_s20 = sshll.u32 %s1353_s11, 2 }
  0x2b   : > { %s388_s15 = scalar_lea.vmem %s1323_s0, %s885_s10  ;;  %s392_s24 = scalar_lea.vmem %s1327_s4, %s1199_s23 }
  0x2c   : > { %s1212_s19 = scalar_lea.vmem %s1330_s7, %s885_s10  ;;  %s1217_s21 = scalar_lea.vmem %s1328_s5, %s887_s20 }
  0x2d   : > { %409 = sbr.rel (%p890_p13) target bundleno = 232 (0xe8), region = 93 }
  0x32   : > { %v1221_v4 = vld [vmem:[%s388_s15 + $0x10] sm:$0xff]  ;;  %vm414_vm0 = vcmask 261120   ;;  %v897_v5 = vld [vmem:[%s1329_s6] ss:$0 sm:$0xff]  ;;  %v1234_v11 = vld [vmem:[%s388_s15 + $0x18] sm:$0xff]  ;;  %vm513_vm1 = vcmask 257024  }
  0x33   : > { %v1226_v6 = vld [vmem:[%s388_s15] sm:$0xff]  ;;  %v421_v7 = vsel %vm414_vm0, %v1221_v4, 0.0  ;;  %v527_v8 = vadd.f32 %v897_v5, %v1221_v4  ;;  %v1236_v12 = vld [vmem:[%s388_s15 + $0x8] sm:$0xff]  ;;  %v528_v13 = vadd.f32 %v897_v5, %v1234_v11  ;;  %v424_v15 = vsel %vm414_vm0, %v1234_v11, 0.0 }
  0x34   : > { %v415_v9 = vsel %vm414_vm0, %v1226_v6, 0.0  ;;  %v525_v10 = vadd.f32 %v897_v5, %v1226_v6  ;;  %422 = vadd.xlane.f32.xlu1 %v421_v7  ;;  %v526_v14 = vadd.f32 %v897_v5, %v1236_v12  ;;  %v418_v16 = vsel %vm414_vm0, %v1236_v12, 0.0  ;;  %v891_v56 = vld [vmem:[%s1324_s1] ss:$0 sm:$0xff] }
  0x35   : > { %416 = vadd.xlane.f32.xlu0 %v415_v9  ;;  %531 = vst.msk [vmem:[#allocation3 + $0x10] sm:$0xff] %vm414_vm0, %v527_v8  ;;  %v428_v17 = vmul.f32 %v1236_v12, %v1236_v12  ;;  %v427_v18 = vmul.f32 %v1226_v6, %v1226_v6  ;;  %532 = vst.msk [vmem:[#allocation3 + $0x18] sm:$0xff] %vm414_vm0, %v528_v13  ;;  %v430_v21 = vmul.f32 %v1234_v11, %v1234_v11  ;;  %v892_v59 = vld [vmem:[%s1325_s2] ss:$0 sm:$0xff] }
  0x36   : > { %529 = vst.msk [vmem:[#allocation3] sm:$0xff] %vm414_vm0, %v525_v10  ;;  %530 = vst.msk [vmem:[#allocation3 + $0x8] sm:$0xff] %vm414_vm0, %v526_v14  ;;  %v429_v22 = vmul.f32 %v1221_v4, %v1221_v4 }
  0x37   : > { %v434_v19 = vsel %vm414_vm0, %v428_v17, 0.0  ;;  %v431_v20 = vsel %vm414_vm0, %v427_v18, 0.0  ;;  %v440_v23 = vsel %vm414_vm0, %v430_v21, 0.0 }
  0x38   : > { %425 = vadd.xlane.f32.xlu1 %v424_v15  ;;  %v437_v24 = vsel %vm414_vm0, %v429_v22, 0.0 }
  0x39   : > { %419 = vadd.xlane.f32.xlu0 %v418_v16 }
  0x3c   : > { %435 = vadd.xlane.f32.xlu1 %v434_v19 }
  0x3d   : > { %432 = vadd.xlane.f32.xlu0 %v431_v20 }
  0x40   : > { %441 = vadd.xlane.f32.xlu1 %v440_v23 }
  0x41   : > { %438 = vadd.xlane.f32.xlu0 %v437_v24 }
  0xbd   : > { %v423_v25 = vpop.xlane.xlu1 %422 }
  0xbe   : > { %v417_v26 = vpop.xlane.xlu0 %416  ;;  %v445_v31 = vmul.f32 0.03125, %v423_v25 }
  0xbf   : > { %v443_v29 = vmul.f32 0.03125, %v417_v26 }
  0xc0   : > { %v453_v41 = vmul.f32 %v445_v31, %v445_v31  ;;  %v461_v0 = vsub.f32 %v1221_v4, %v445_v31 }
  0xc1   : > { %v426_v27 = vpop.xlane.xlu1 %425  ;;  %v451_v35 = vmul.f32 %v443_v29, %v443_v29  ;;  %v459_v55 = vsub.f32 %v1226_v6, %v443_v29 }
  0xc2   : > { %v420_v28 = vpop.xlane.xlu0 %419  ;;  %v446_v32 = vmul.f32 0.03125, %v426_v27 }
  0xc3   : > { %v444_v30 = vmul.f32 0.03125, %v420_v28 }
  0xc4   : > { %v454_v42 = vmul.f32 %v446_v32, %v446_v32  ;;  %v462_v61 = vsub.f32 %v1234_v11, %v446_v32 }
  0xc5   : > { %v436_v33 = vpop.xlane.xlu1 %435  ;;  %v452_v36 = vmul.f32 %v444_v30, %v444_v30  ;;  %v460_v53 = vsub.f32 %v1236_v12, %v444_v30 }
  0xc6   : > { %v433_v34 = vpop.xlane.xlu0 %432  ;;  %v448_v37 = vmul.f32 0.03125, %v436_v33 }
  0xc7   : > { %v447_v38 = vmul.f32 0.03125, %v433_v34 }
  0xc8   : > { %v456_v39 = vsub.f32 %v448_v37, %v452_v36 }
  0xc9   : > { %v455_v40 = vsub.f32 %v447_v38, %v451_v35  ;;  %v442_v43 = vpop.xlane.xlu1 %441 }
  0xca   : > { %v439_v44 = vpop.xlane.xlu0 %438  ;;  %v464_v45 = vadd.f32 1e-06, %v456_v39  ;;  %v450_v47 = vmul.f32 0.03125, %v442_v43 }
  0xcb   : > { %v463_v46 = vadd.f32 1e-06, %v455_v40  ;;  %v449_v48 = vmul.f32 0.03125, %v439_v44 }
  0xcc   : > { %1018 = vrsqrt.f32 %v464_v45  ;;  %v458_v49 = vsub.f32 %v450_v47, %v454_v42 }
  0xcd   : > { %v457_v50 = vsub.f32 %v449_v48, %v453_v41  ;;  %1020 = vrsqrt.f32 %v463_v46 }
  0xce   : > { %v466_v51 = vadd.f32 1e-06, %v458_v49 }
  0xcf   : > { %v465_v52 = vadd.f32 1e-06, %v457_v50 }
  0xd0   : > { %1022 = vrsqrt.f32 %v466_v51 }
  0xd1   : > { %1024 = vrsqrt.f32 %v465_v52 }
  0xd9   : > { %v1019_v54 = vpop.eup %1018 }
  0xda   : > { %v1021_v57 = vpop.eup %1020  ;;  %v472_v58 = vmul.f32 %v1019_v54, %v460_v53 }
  0xdb   : > { %v471_v60 = vmul.f32 %v1021_v57, %v459_v55 }
  0xdc   : > { %v483_v62 = vmul.f32 %v891_v56, %v472_v58 }
  0xdd   : > { %v1023_v63 = vpop.eup %1022  ;;  %v482_v1 = vmul.f32 %v891_v56, %v471_v60 }
  0xde   : > { %v1025_v2 = vpop.eup %1024  ;;  %v494_v3 = vadd.f32 %v892_v59, %v483_v62  ;;  %v474_v5 = vmul.f32 %v1023_v63, %v462_v61 }
  0xdf   : > { %v493_v6 = vadd.f32 %v892_v59, %v482_v1  ;;  %v473_v7 = vmul.f32 %v1025_v2, %v461_v0 }
  0xe0   : > { %v917_v8 = vpack.c.bf16 %v494_v3, %v494_v3  ;;  %v485_v9 = vmul.f32 %v891_v56, %v474_v5 }
  0xe1   : > { %v916_v10 = vpack.c.bf16 %v493_v6, %v493_v6  ;;  %v484_v12 = vmul.f32 %v891_v56, %v473_v7 }
  0xe2   : > { %515 = vst.msk [vmem:[#allocation2 + $0x4] sm:$0xf] %vm513_vm1, %v917_v8  ;;  %v496_v13 = vadd.f32 %v892_v59, %v485_v9 }
  0xe3   : > { %514 = vst.msk [vmem:[#allocation2] sm:$0xf] %vm513_vm1, %v916_v10  ;;  %v495_v14 = vadd.f32 %v892_v59, %v484_v12 }
  0xe4   : > { %v919_v11 = vpack.c.bf16 %v496_v13, %v496_v13 }
  0xe5   : > { %v918_v15 = vpack.c.bf16 %v495_v14, %v495_v14 }
  0xe6   : > { %517 = vst.msk [vmem:[#allocation2 + $0xc] sm:$0xf] %vm513_vm1, %v919_v11 }
  0xe7   : > { %516 = vst.msk [vmem:[#allocation2 + $0x8] sm:$0xf] %vm513_vm1, %v918_v15 }
  0xe8 PF: > { %v1026_v4 = vld [vmem:[%s342_s8 + $0x8] sm:$0xff]   ;;  %v1027_v16 = vld [vmem:[%s342_s8] sm:$0xff]   ;;  %vm570_vm2 = vcmask 261120   ;;  %p913_p0 = scmp.ne.s32.totalorder %s1076_s26, 1 }
  0xe9   : > { %934 = vmatprep.subr.bf16.mxu0 %v1026_v4  ;;  %v1030_v18 = vld [vmem:[%s1217_s21 + $0x38] sm:$0xff]   ;;  %v1031_v19 = vld [vmem:[%s1217_s21 + $0x30] sm:$0xff]   ;;  %v1032_v21 = vld [vmem:[%s1217_s21 + $0x28] sm:$0xff]  }
  0xea   : > { %v1028_v17 = vld [vmem:[#allocation2] sm:$0xff]   ;;  %935 = vmatpush3.bf16.msra.mxu0 %v1026_v4  ;;  %942 = vmatprep.subr.bf16.mxu1 %v1030_v18  ;;  %v1034_v23 = vld [vmem:[%s1217_s21 + $0x18] sm:$0xff]   ;;  %v1035_v24 = vld [vmem:[%s1217_s21 + $0x10] sm:$0xff]  }
  0xeb   : > { %936 = vmatprep.subr.bf16.mxu0 %v1027_v16  ;;  %938 = vmatprep.mubr.msk.bf16.mxu0 %vm570_vm2, %v1028_v17  ;;  %v1033_v22 = vld [vmem:[%s1217_s21 + $0x20] sm:$0xff]   ;;  %v1036_v25 = vld [vmem:[%s1217_s21 + $0x8] sm:$0xff]   ;;  %v630_v44 = vld [vmem:[#allocation3] sm:$0xff] }
  0xec   : > { %943 = vmatpush3.bf16.msra.mxu1 %v1030_v18  ;;  %v1037_v26 = vld [vmem:[%s1217_s21] sm:$0xff]   ;;  %v633_v47 = vld [vmem:[#allocation3 + $0x18] sm:$0xff]  ;;  %v631_v50 = vld [vmem:[#allocation3 + $0x8] sm:$0xff] }
  0xed   : > { %944 = vmatprep.subr.bf16.mxu1 %v1031_v19  ;;  %v898_v29 = vld [vmem:[%s392_s24] ss:$0 sm:$0xff] }
  0xee   : > { %v1029_v20 = vld [vmem:[#allocation2 + $0x8] sm:$0xff]   ;;  %937 = vmatpush3.bf16.msra.mxu0 %v1027_v16  ;;  %v632_v42 = vld [vmem:[#allocation3 + $0x10] sm:$0xff] }
  0xf0   : > { %945 = vmatpush3.bf16.msra.mxu1 %v1031_v19 }
  0xf1   : > { %939 = vmatmul.mubr.msk.bf16.vlgmr.msra.gmra.mxu0 %vm570_vm2, %v1029_v20  ;;  %946 = vmatprep.subr.bf16.mxu1 %v1032_v21 }
  0xf4   : > { %947 = vmatpush3.bf16.msra.mxu1 %v1032_v21 }
  0xf5   : > { %948 = vmatprep.subr.bf16.mxu1 %v1033_v22 }
  0xf8   : > { %949 = vmatpush3.bf16.msra.mxu1 %v1033_v22 }
  0xf9   : > { %950 = vmatprep.subr.bf16.mxu1 %v1034_v23 }
  0xfc   : > { %951 = vmatpush3.bf16.msra.mxu1 %v1034_v23 }
  0xfd   : > { %952 = vmatprep.subr.bf16.mxu1 %v1035_v24 }
 0x100   : > { %953 = vmatpush3.bf16.msra.mxu1 %v1035_v24 }
 0x101   : > { %954 = vmatprep.subr.bf16.mxu1 %v1036_v25 }
 0x104   : > { %955 = vmatpush3.bf16.msra.mxu1 %v1036_v25 }
 0x105   : > { %956 = vmatprep.subr.bf16.mxu1 %v1037_v26 }
 0x108   : > { %957 = vmatpush3.bf16.msra.mxu1 %v1037_v26 }
 0x1b1   : > { %v940_v27 = vpop.f32.mrf.mxu0 }
 0x1b2   : > { %v620_v33 = vadd.f32 %v940_v27, %v898_v29 }
 0x1b3   : > { %v611_v28 = vpop.f32.mrf.mxu0 }
 0x1b4   : > { %v612_v31 = vadd.f32 %v898_v29, %v611_v28  ;;  %v628_v39 = vmax.f32 %v620_v33, 0.0 }
 0x1b5   : > { %v941_v30 = vpop.f32.mrf.mxu0 }
 0x1b6   : > { %v623_v32 = vadd.f32 %v941_v30, %v898_v29  ;;  %v626_v37 = vmax.f32 %v612_v31, 0.0 }
 0x1b7   : > { %v614_v34 = vpop.f32.mrf.mxu0 }
 0x1b8   : > { %v615_v35 = vadd.f32 %v898_v29, %v614_v34  ;;  %v629_v36 = vmax.f32 %v623_v32, 0.0 }
 0x1ba   : > { %v627_v38 = vmax.f32 %v615_v35, 0.0  ;;  %v635_v41 = vpack.c.bf16 %v629_v36, %v628_v39 }
 0x1bc   : > { %v634_v40 = vpack.c.bf16 %v627_v38, %v626_v37 }
 0x1be   : > { %958 = vmatprep.mubr.bf16.mxu1 %v634_v40 }
 0x1bf   : > { %959 = vmatmul.mubr.bf16.vlgmr.msra.gmra.mxu1 %v635_v41 }
 0x27f   : > { %v960_v43 = vpop.f32.mrf.mxu1 }
 0x280   : > { %v751_v45 = vadd.f32 %v960_v43, %v632_v42 }
 0x281   : > { %v734_v46 = vpop.f32.mrf.mxu1 }
 0x282   : > { %755 = vst.msk [vmem:[#allocation3 + $0x10] sm:$0xff] %vm570_vm2, %v751_v45  ;;  %v749_v48 = vadd.f32 %v734_v46, %v630_v44 }
 0x283   : > { %v961_v49 = vpop.f32.mrf.mxu1 }
 0x284   : > { %753 = vst.msk [vmem:[#allocation3] sm:$0xff] %vm570_vm2, %v749_v48  ;;  %v752_v51 = vadd.f32 %v961_v49, %v633_v47  ;;  %760 = sbr.rel (%p913_p0) target bundleno = 657 (0x291), region = 97 }
 0x285   : > { %v737_v52 = vpop.f32.mrf.mxu1 }
 0x286   : > { %756 = vst.msk [vmem:[#allocation3 + $0x18] sm:$0xff] %vm570_vm2, %v752_v51  ;;  %v750_v53 = vadd.f32 %v737_v52, %v631_v50 }
 0x288   : > { %754 = vst.msk [vmem:[#allocation3 + $0x8] sm:$0xff] %vm570_vm2, %v750_v53 }
 0x289   : > { %v763_v56 = vld [vmem:[#allocation3 + $0x10] sm:$0xff] }
 0x28a   : > { %767 = vst.msk [vmem:[%s1212_s19 + $0x10] sm:$0xff] %vm570_vm2, %v763_v56 }
 0x28b   : > { %v761_v54 = vld [vmem:[#allocation3] sm:$0xff] }
 0x28c   : > { %765 = vst.msk [vmem:[%s1212_s19] sm:$0xff] %vm570_vm2, %v761_v54 }
 0x28d   : > { %v764_v57 = vld [vmem:[#allocation3 + $0x18] sm:$0xff] }
 0x28e   : > { %768 = vst.msk [vmem:[%s1212_s19 + $0x18] sm:$0xff] %vm570_vm2, %v764_v57 }
 0x28f   : > { %v762_v55 = vld [vmem:[#allocation3 + $0x8] sm:$0xff] }
 0x290   : > { %766 = vst.msk [vmem:[%s1212_s19 + $0x8] sm:$0xff] %vm570_vm2, %v762_v55 }
 0x291 PF: > { %s17_s30 = sadd.s32 1, %s1092_s30   ;;  %s1336_s23 = sld [smem:[#allocation5_spill]] }
 0x292   : > { %p14_p1 = scmp.ge.s32.totalorder %s17_s30, 8   ;;  %s1337_s15 = sld [smem:[#allocation6_spill]] }
 0x293   : > { %s1338_s24 = smov %s1072_s25  ;;  %s1339_s25 = smov %s1183_s12 }
 0x294   : > { %s1340_s26 = smov %s1084_s28  ;;  %s1341_s27 = smov %s1088_s29 }
 0x295   :  { %16 = sbr.rel (!%p14_p1) target bundleno = 6 (0x6), region = 141 }
 0x297   : > { %s1342_s28 = smov %s1336_s23 }
 0x298   : > { %s1343_s29 = smov %s1337_s15 }

// kernel: tpu_custom_call.1
= control target key start
LH: loop header
LB: loop body
LE: loop exit
PB: predicated region body
PF: predicated region fallthrough
CT: control target
= control target key end

     0   :  { %s1323_s0 = inlined_call_operand.vmem [shape: f32[96,32], index: 0, kind: input, shape index: {}]   ;;  %s1324_s1 = inlined_call_operand.vmem [shape: f32[1,32], index: 1, kind: input, shape index: {}]   ;;  %s1325_s2 = inlined_call_operand.vmem [shape: f32[1,32], index: 2, kind: input, shape index: {}]   ;;  %s1326_s3 = inlined_call_operand.vmem [shape: bf16[32,256], index: 3, kind: input, shape index: {}]   ;;  %s1327_s4 = inlined_call_operand.vmem [shape: f32[1,256], index: 4, kind: input, shape index: {}]   ;;  %s1328_s5 = inlined_call_operand.vmem [shape: bf16[256,32], index: 5, kind: input, shape index: {}]   ;;  %s1329_s6 = inlined_call_operand.vmem [shape: f32[1,32], index: 6, kind: input, shape index: {}]   ;;  %s1330_s7 = inlined_call_operand.vmem [shape: f32[96,32], index: 7, kind: output, shape index: {}]  }
   0x1   :  { %1332 = sst [smem:[#allocation7_spill]] %s1326_s3 }
   0x2   :  { %s1134_s24 = smov 0   ;;  %s1136_s25 = smov 0  }
   0x3   :  { %s1138_s26 = smov 0   ;;  %s1140_s27 = smov 0  }
   0x4   :  { %s1142_s28 = smov 0   ;;  %s1144_s29 = smov 0  }
   0x5   :  { %s1146_s30 = smov 0  }
   0x6 LB: > { %s26_s8 = sadd.s32 1, %s1084_s28  ;;  %s29_s9 = sadd.s32 1, %s1088_s29  ;;  %s1092_s30 = sphi %s1146_s30, %s17_s30   ;;  %s1088_s29 = sphi %s1144_s29, %s1343_s29   ;;  %s1084_s28 = sphi %s1142_s28, %s1342_s28   ;;  %s1080_s27 = sphi %s1140_s27, %s1341_s27   ;;  %s1076_s26 = sphi %s1138_s26, %s1340_s26   ;;  %s1072_s25 = sphi %s1136_s25, %s1339_s25   ;;  %s1068_s24 = sphi %s1134_s24, %s1338_s24  }
   0x7   : > { %p27_p0 = scmp.ge.s32.totalorder %s26_s8, 2  ;;  %s104_s10 = sadd.s32 1, %s1072_s25 }
   0x8   : > { %p111_p1 = scmp.ne.s32.totalorder %s1072_s25, %s1068_s24  ;;  %p112_p2 = scmp.eq.s32.totalorder %s1092_s30, 0 }
   0x9   : > { %s1345_s8 = smov (%p27_p0, %s26_s8), 0  ;;  %s1347_s9 = smov (!%p27_p0, %s29_s9), %s1088_s29 }
   0xa   : > { %1333 = sst [smem:[#allocation5_spill]] %s1345_s8  ;;  %s101_s11 = ssub.s32 %s1084_s28, %s1345_s8 }
   0xb   : > { %p113_p3 = por %p112_p2, %p111_p1  ;;  %p31_p4 = scmp.ge.s32.totalorder %s1347_s9, 3 }
   0xc   : > { %p102_p5 = scmp.eq.s32.totalorder %s101_s11, 0  ;;  %p879_p6 = scmp.ge.s32.totalorder %s1092_s30, 6 }
   0xd   : > { %s1349_s9 = smov (%p31_p4, %s1347_s9), 0 }
   0xe   : > { %1334 = sst [smem:[#allocation6_spill]] %s1349_s9  ;;  %245 = sbr.rel (%p879_p6) target bundleno = 31 (0x1f), region = 28 }
   0xf   : > { %s1183_s12 = scalar_select %p102_p5, %s1072_s25, %s104_s10  }
  0x13   : > { %257 = sbr.rel (!%p113_p3) target bundleno = 31 (0x1f), region = 36  ;;  %s259_s13 = sand.u32 (%p113_p3), 1, %s1072_s25  }
  0x14   : > { %s881_s14 = sshll.u32 (%p113_p3), %s1084_s28, 2  ;;  %s880_s15 = sshll.u32 (%p113_p3), %s259_s13, 4 }
  0x15   : > { %s1335_s3 = sld [smem:[#allocation7_spill]] (%p113_p3)  ;;  %s261_s19 = scalar_lea.vmem (%p113_p3), [#allocation4], %s880_s15 }
  0x1b   : > { %s263_s18 = scalar_lea.vmem %s1335_s3, %s881_s14 }
  0x1c   : > { %v280_v0 = vld [vmem:[%s263_s18] sm:$0xf]  ;;  %v282_v1 = vld [vmem:[%s263_s18 + $0x8] sm:$0xf]  ;;  %v284_v2 = vld [vmem:[%s263_s18 + $0x10] sm:$0xf] }
  0x1d   : > { %281 = vst [vmem:[%s261_s19] sm:$0xf] %v280_v0  ;;  %283 = vst [vmem:[%s261_s19 + $0x4] sm:$0xf] %v282_v1  ;;  %v286_v3 = vld [vmem:[%s263_s18 + $0x18] sm:$0xf] }
  0x1e   : > { %285 = vst [vmem:[%s261_s19 + $0x8] sm:$0xf] %v284_v2  ;;  %287 = vst [vmem:[%s261_s19 + $0xc] sm:$0xf] %v286_v3 }
  0x1f PF: > { %p882_p7 = scmp.ge.s32.totalorder %s1092_s30, 1  ;;  %p333_p8 = scmp.lt.s32.totalorder %s1092_s30, 7 }
  0x21   : > { %p334_p9 = pnand %p882_p7, %p333_p8 }
  0x22   : > { %s340_s20 = sand.u32 (!%p334_p9), 1, %s1068_s24   ;;  %s884_s21 = sshll.u32 (!%p334_p9), %s1080_s27, 2 }
  0x23   : > { %337 = sbr.rel (%p334_p9) target bundleno = 657 (0x291), region = 85  ;;  %s1195_s22 = sshll.u32 (!%p334_p9), %s340_s20, 4 }
  0x24   : > { %p385_p10 = scmp.lt.s32.totalorder (!%p334_p9), %s884_s21, 11  ;;  %p390_p11 = scmp.lt.s32.totalorder (!%p334_p9), %s1076_s26, 1 }
  0x25   : > { %s886_s11 = sshll.u32 (!%p334_p9), %s1076_s26, 4  ;;  %s342_s8 = scalar_lea.vmem (!%p334_p9), [#allocation4], %s1195_s22 }
  0x26   : > { %p394_p12 = scmp.lt.s32.totalorder (!%p334_p9), %s886_s11, 31  ;;  %p890_p13 = scmp.ne.s32.totalorder (!%p334_p9), %s1076_s26, 0 }
  0x28   : > { %s1351_s21 = smov (!%p385_p10, %s884_s21), 11  ;;  %s1353_s11 = smov (!%p394_p12, %s886_s11), 31 }
  0x29   : > { %s1199_s23 = scalar_select %p390_p11, %s1076_s26, 1 }
  0x2a   : > { %s885_s10 = sshll.u32 %s1351_s21, 3  ;;  %s887_s20 = sshll.u32 %s1353_s11, 2 }
  0x2b   : > { %s388_s15 = scalar_lea.vmem %s1323_s0, %s885_s10  ;;  %s392_s24 = scalar_lea.vmem %s1327_s4, %s1199_s23 }
  0x2c   : > { %s1212_s19 = scalar_lea.vmem %s1330_s7, %s885_s10  ;;  %s1217_s21 = scalar_lea.vmem %s1328_s5, %s887_s20 }
  0x2d   : > { %409 = sbr.rel (%p890_p13) target bundleno = 232 (0xe8), region = 93 }
  0x32   : > { %v1221_v4 = vld [vmem:[%s388_s15 + $0x10] sm:$0xff]  ;;  %vm414_vm0 = vcmask 261120   ;;  %v897_v5 = vld [vmem:[%s1329_s6] ss:$0 sm:$0xff]  ;;  %v1234_v11 = vld [vmem:[%s388_s15 + $0x18] sm:$0xff]  ;;  %vm513_vm1 = vcmask 257024  }
  0x33   : > { %v1226_v6 = vld [vmem:[%s388_s15] sm:$0xff]  ;;  %v421_v7 = vsel %vm414_vm0, %v1221_v4, 0.0  ;;  %v527_v8 = vadd.f32 %v897_v5, %v1221_v4  ;;  %v1236_v12 = vld [vmem:[%s388_s15 + $0x8] sm:$0xff]  ;;  %v528_v13 = vadd.f32 %v897_v5, %v1234_v11  ;;  %v424_v15 = vsel %vm414_vm0, %v1234_v11, 0.0 }
  0x34   : > { %v415_v9 = vsel %vm414_vm0, %v1226_v6, 0.0  ;;  %v525_v10 = vadd.f32 %v897_v5, %v1226_v6  ;;  %422 = vadd.xlane.f32.xlu1 %v421_v7  ;;  %v526_v14 = vadd.f32 %v897_v5, %v1236_v12  ;;  %v418_v16 = vsel %vm414_vm0, %v1236_v12, 0.0  ;;  %v891_v56 = vld [vmem:[%s1324_s1] ss:$0 sm:$0xff] }
  0x35   : > { %416 = vadd.xlane.f32.xlu0 %v415_v9  ;;  %531 = vst.msk [vmem:[#allocation3 + $0x10] sm:$0xff] %vm414_vm0, %v527_v8  ;;  %v428_v17 = vmul.f32 %v1236_v12, %v1236_v12  ;;  %v427_v18 = vmul.f32 %v1226_v6, %v1226_v6  ;;  %532 = vst.msk [vmem:[#allocation3 + $0x18] sm:$0xff] %vm414_vm0, %v528_v13  ;;  %v430_v21 = vmul.f32 %v1234_v11, %v1234_v11  ;;  %v892_v59 = vld [vmem:[%s1325_s2] ss:$0 sm:$0xff] }
  0x36   : > { %529 = vst.msk [vmem:[#allocation3] sm:$0xff] %vm414_vm0, %v525_v10  ;;  %530 = vst.msk [vmem:[#allocation3 + $0x8] sm:$0xff] %vm414_vm0, %v526_v14  ;;  %v429_v22 = vmul.f32 %v1221_v4, %v1221_v4 }
  0x37   : > { %v434_v19 = vsel %vm414_vm0, %v428_v17, 0.0  ;;  %v431_v20 = vsel %vm414_vm0, %v427_v18, 0.0  ;;  %v440_v23 = vsel %vm414_vm0, %v430_v21, 0.0 }
  0x38   : > { %425 = vadd.xlane.f32.xlu1 %v424_v15  ;;  %v437_v24 = vsel %vm414_vm0, %v429_v22, 0.0 }
  0x39   : > { %419 = vadd.xlane.f32.xlu0 %v418_v16 }
  0x3c   : > { %435 = vadd.xlane.f32.xlu1 %v434_v19 }
  0x3d   : > { %432 = vadd.xlane.f32.xlu0 %v431_v20 }
  0x40   : > { %441 = vadd.xlane.f32.xlu1 %v440_v23 }
  0x41   : > { %438 = vadd.xlane.f32.xlu0 %v437_v24 }
  0xbd   : > { %v423_v25 = vpop.xlane.xlu1 %422 }
  0xbe   : > { %v417_v26 = vpop.xlane.xlu0 %416  ;;  %v445_v31 = vmul.f32 0.03125, %v423_v25 }
  0xbf   : > { %v443_v29 = vmul.f32 0.03125, %v417_v26 }
  0xc0   : > { %v453_v41 = vmul.f32 %v445_v31, %v445_v31  ;;  %v461_v0 = vsub.f32 %v1221_v4, %v445_v31 }
  0xc1   : > { %v426_v27 = vpop.xlane.xlu1 %425  ;;  %v451_v35 = vmul.f32 %v443_v29, %v443_v29  ;;  %v459_v55 = vsub.f32 %v1226_v6, %v443_v29 }
  0xc2   : > { %v420_v28 = vpop.xlane.xlu0 %419  ;;  %v446_v32 = vmul.f32 0.03125, %v426_v27 }
  0xc3   : > { %v444_v30 = vmul.f32 0.03125, %v420_v28 }
  0xc4   : > { %v454_v42 = vmul.f32 %v446_v32, %v446_v32  ;;  %v462_v61 = vsub.f32 %v1234_v11, %v446_v32 }
  0xc5   : > { %v436_v33 = vpop.xlane.xlu1 %435  ;;  %v452_v36 = vmul.f32 %v444_v30, %v444_v30  ;;  %v460_v53 = vsub.f32 %v1236_v12, %v444_v30 }
  0xc6   : > { %v433_v34 = vpop.xlane.xlu0 %432  ;;  %v448_v37 = vmul.f32 0.03125, %v436_v33 }
  0xc7   : > { %v447_v38 = vmul.f32 0.03125, %v433_v34 }
  0xc8   : > { %v456_v39 = vsub.f32 %v448_v37, %v452_v36 }
  0xc9   : > { %v455_v40 = vsub.f32 %v447_v38, %v451_v35  ;;  %v442_v43 = vpop.xlane.xlu1 %441 }
  0xca   : > { %v439_v44 = vpop.xlane.xlu0 %438  ;;  %v464_v45 = vadd.f32 1e-06, %v456_v39  ;;  %v450_v47 = vmul.f32 0.03125, %v442_v43 }
  0xcb   : > { %v463_v46 = vadd.f32 1e-06, %v455_v40  ;;  %v449_v48 = vmul.f32 0.03125, %v439_v44 }
  0xcc   : > { %1018 = vrsqrt.f32 %v464_v45  ;;  %v458_v49 = vsub.f32 %v450_v47, %v454_v42 }
  0xcd   : > { %v457_v50 = vsub.f32 %v449_v48, %v453_v41  ;;  %1020 = vrsqrt.f32 %v463_v46 }
  0xce   : > { %v466_v51 = vadd.f32 1e-06, %v458_v49 }
  0xcf   : > { %v465_v52 = vadd.f32 1e-06, %v457_v50 }
  0xd0   : > { %1022 = vrsqrt.f32 %v466_v51 }
  0xd1   : > { %1024 = vrsqrt.f32 %v465_v52 }
  0xd9   : > { %v1019_v54 = vpop.eup %1018 }
  0xda   : > { %v1021_v57 = vpop.eup %1020  ;;  %v472_v58 = vmul.f32 %v1019_v54, %v460_v53 }
  0xdb   : > { %v471_v60 = vmul.f32 %v1021_v57, %v459_v55 }
  0xdc   : > { %v483_v62 = vmul.f32 %v891_v56, %v472_v58 }
  0xdd   : > { %v1023_v63 = vpop.eup %1022  ;;  %v482_v1 = vmul.f32 %v891_v56, %v471_v60 }
  0xde   : > { %v1025_v2 = vpop.eup %1024  ;;  %v494_v3 = vadd.f32 %v892_v59, %v483_v62  ;;  %v474_v5 = vmul.f32 %v1023_v63, %v462_v61 }
  0xdf   : > { %v493_v6 = vadd.f32 %v892_v59, %v482_v1  ;;  %v473_v7 = vmul.f32 %v1025_v2, %v461_v0 }
  0xe0   : > { %v917_v8 = vpack.c.bf16 %v494_v3, %v494_v3  ;;  %v485_v9 = vmul.f32 %v891_v56, %v474_v5 }
  0xe1   : > { %v916_v10 = vpack.c.bf16 %v493_v6, %v493_v6  ;;  %v484_v12 = vmul.f32 %v891_v56, %v473_v7 }
  0xe2   : > { %515 = vst.msk [vmem:[#allocation2 + $0x4] sm:$0xf] %vm513_vm1, %v917_v8  ;;  %v496_v13 = vadd.f32 %v892_v59, %v485_v9 }
  0xe3   : > { %514 = vst.msk [vmem:[#allocation2] sm:$0xf] %vm513_vm1, %v916_v10  ;;  %v495_v14 = vadd.f32 %v892_v59, %v484_v12 }
  0xe4   : > { %v919_v11 = vpack.c.bf16 %v496_v13, %v496_v13 }
  0xe5   : > { %v918_v15 = vpack.c.bf16 %v495_v14, %v495_v14 }
  0xe6   : > { %517 = vst.msk [vmem:[#allocation2 + $0xc] sm:$0xf] %vm513_vm1, %v919_v11 }
  0xe7   : > { %516 = vst.msk [vmem:[#allocation2 + $0x8] sm:$0xf] %vm513_vm1, %v918_v15 }
  0xe8 PF: > { %v1026_v4 = vld [vmem:[%s342_s8 + $0x8] sm:$0xff]   ;;  %v1027_v16 = vld [vmem:[%s342_s8] sm:$0xff]   ;;  %vm570_vm2 = vcmask 261120   ;;  %p913_p0 = scmp.ne.s32.totalorder %s1076_s26, 1 }
  0xe9   : > { %934 = vmatprep.subr.bf16.mxu0 %v1026_v4  ;;  %v1030_v18 = vld [vmem:[%s1217_s21 + $0x38] sm:$0xff]   ;;  %v1031_v19 = vld [vmem:[%s1217_s21 + $0x30] sm:$0xff]   ;;  %v1032_v21 = vld [vmem:[%s1217_s21 + $0x28] sm:$0xff]  }
  0xea   : > { %v1028_v17 = vld [vmem:[#allocation2] sm:$0xff]   ;;  %935 = vmatpush3.bf16.msra.mxu0 %v1026_v4  ;;  %942 = vmatprep.subr.bf16.mxu1 %v1030_v18  ;;  %v1034_v23 = vld [vmem:[%s1217_s21 + $0x18] sm:$0xff]   ;;  %v1035_v24 = vld [vmem:[%s1217_s21 + $0x10] sm:$0xff]  }
  0xeb   : > { %936 = vmatprep.subr.bf16.mxu0 %v1027_v16  ;;  %938 = vmatprep.mubr.msk.bf16.mxu0 %vm570_vm2, %v1028_v17  ;;  %v1033_v22 = vld [vmem:[%s1217_s21 + $0x20] sm:$0xff]   ;;  %v1036_v25 = vld [vmem:[%s1217_s21 + $0x8] sm:$0xff]   ;;  %v630_v44 = vld [vmem:[#allocation3] sm:$0xff] }
  0xec   : > { %943 = vmatpush3.bf16.msra.mxu1 %v1030_v18  ;;  %v1037_v26 = vld [vmem:[%s1217_s21] sm:$0xff]   ;;  %v633_v47 = vld [vmem:[#allocation3 + $0x18] sm:$0xff]  ;;  %v631_v50 = vld [vmem:[#allocation3 + $0x8] sm:$0xff] }
  0xed   : > { %944 = vmatprep.subr.bf16.mxu1 %v1031_v19  ;;  %v898_v29 = vld [vmem:[%s392_s24] ss:$0 sm:$0xff] }
  0xee   : > { %v1029_v20 = vld [vmem:[#allocation2 + $0x8] sm:$0xff]   ;;  %937 = vmatpush3.bf16.msra.mxu0 %v1027_v16  ;;  %v632_v42 = vld [vmem:[#allocation3 + $0x10] sm:$0xff] }
  0xf0   : > { %945 = vmatpush3.bf16.msra.mxu1 %v1031_v19 }
  0xf1   : > { %939 = vmatmul.mubr.msk.bf16.vlgmr.msra.gmra.mxu0 %vm570_vm2, %v1029_v20  ;;  %946 = vmatprep.subr.bf16.mxu1 %v1032_v21 }
  0xf4   : > { %947 = vmatpush3.bf16.msra.mxu1 %v1032_v21 }
  0xf5   : > { %948 = vmatprep.subr.bf16.mxu1 %v1033_v22 }
  0xf8   : > { %949 = vmatpush3.bf16.msra.mxu1 %v1033_v22 }
  0xf9   : > { %950 = vmatprep.subr.bf16.mxu1 %v1034_v23 }
  0xfc   : > { %951 = vmatpush3.bf16.msra.mxu1 %v1034_v23 }
  0xfd   : > { %952 = vmatprep.subr.bf16.mxu1 %v1035_v24 }
 0x100   : > { %953 = vmatpush3.bf16.msra.mxu1 %v1035_v24 }
 0x101   : > { %954 = vmatprep.subr.bf16.mxu1 %v1036_v25 }
 0x104   : > { %955 = vmatpush3.bf16.msra.mxu1 %v1036_v25 }
 0x105   : > { %956 = vmatprep.subr.bf16.mxu1 %v1037_v26 }
 0x108   : > { %957 = vmatpush3.bf16.msra.mxu1 %v1037_v26 }
 0x1b1   : > { %v940_v27 = vpop.f32.mrf.mxu0 }
 0x1b2   : > { %v620_v33 = vadd.f32 %v940_v27, %v898_v29 }
 0x1b3   : > { %v611_v28 = vpop.f32.mrf.mxu0 }
 0x1b4   : > { %v612_v31 = vadd.f32 %v898_v29, %v611_v28  ;;  %v628_v39 = vmax.f32 %v620_v33, 0.0 }
 0x1b5   : > { %v941_v30 = vpop.f32.mrf.mxu0 }
 0x1b6   : > { %v623_v32 = vadd.f32 %v941_v30, %v898_v29  ;;  %v626_v37 = vmax.f32 %v612_v31, 0.0 }
 0x1b7   : > { %v614_v34 = vpop.f32.mrf.mxu0 }
 0x1b8   : > { %v615_v35 = vadd.f32 %v898_v29, %v614_v34  ;;  %v629_v36 = vmax.f32 %v623_v32, 0.0 }
 0x1ba   : > { %v627_v38 = vmax.f32 %v615_v35, 0.0  ;;  %v635_v41 = vpack.c.bf16 %v629_v36, %v628_v39 }
 0x1bc   : > { %v634_v40 = vpack.c.bf16 %v627_v38, %v626_v37 }
 0x1be   : > { %958 = vmatprep.mubr.bf16.mxu1 %v634_v40 }
 0x1bf   : > { %959 = vmatmul.mubr.bf16.vlgmr.msra.gmra.mxu1 %v635_v41 }
 0x27f   : > { %v960_v43 = vpop.f32.mrf.mxu1 }
 0x280   : > { %v751_v45 = vadd.f32 %v960_v43, %v632_v42 }
 0x281   : > { %v734_v46 = vpop.f32.mrf.mxu1 }
 0x282   : > { %755 = vst.msk [vmem:[#allocation3 + $0x10] sm:$0xff] %vm570_vm2, %v751_v45  ;;  %v749_v48 = vadd.f32 %v734_v46, %v630_v44 }
 0x283   : > { %v961_v49 = vpop.f32.mrf.mxu1 }
 0x284   : > { %753 = vst.msk [vmem:[#allocation3] sm:$0xff] %vm570_vm2, %v749_v48  ;;  %v752_v51 = vadd.f32 %v961_v49, %v633_v47  ;;  %760 = sbr.rel (%p913_p0) target bundleno = 657 (0x291), region = 97 }
 0x285   : > { %v737_v52 = vpop.f32.mrf.mxu1 }
 0x286   : > { %756 = vst.msk [vmem:[#allocation3 + $0x18] sm:$0xff] %vm570_vm2, %v752_v51  ;;  %v750_v53 = vadd.f32 %v737_v52, %v631_v50 }
 0x288   : > { %754 = vst.msk [vmem:[#allocation3 + $0x8] sm:$0xff] %vm570_vm2, %v750_v53 }
 0x289   : > { %v763_v56 = vld [vmem:[#allocation3 + $0x10] sm:$0xff] }
 0x28a   : > { %767 = vst.msk [vmem:[%s1212_s19 + $0x10] sm:$0xff] %vm570_vm2, %v763_v56 }
 0x28b   : > { %v761_v54 = vld [vmem:[#allocation3] sm:$0xff] }
 0x28c   : > { %765 = vst.msk [vmem:[%s1212_s19] sm:$0xff] %vm570_vm2, %v761_v54 }
 0x28d   : > { %v764_v57 = vld [vmem:[#allocation3 + $0x18] sm:$0xff] }
 0x28e   : > { %768 = vst.msk [vmem:[%s1212_s19 + $0x18] sm:$0xff] %vm570_vm2, %v764_v57 }
 0x28f   : > { %v762_v55 = vld [vmem:[#allocation3 + $0x8] sm:$0xff] }
 0x290   : > { %766 = vst.msk [vmem:[%s1212_s19 + $0x8] sm:$0xff] %vm570_vm2, %v762_v55 }
 0x291 PF: > { %s17_s30 = sadd.s32 1, %s1092_s30   ;;  %s1336_s23 = sld [smem:[#allocation5_spill]] }
 0x292   : > { %p14_p1 = scmp.ge.s32.totalorder %s17_s30, 8   ;;  %s1337_s15 = sld [smem:[#allocation6_spill]] }
 0x293   : > { %s1338_s24 = smov %s1072_s25  ;;  %s1339_s25 = smov %s1183_s12 }
 0x294   : > { %s1340_s26 = smov %s1084_s28  ;;  %s1341_s27 = smov %s1088_s29 }
 0x295   :  { %16 = sbr.rel (!%p14_p1) target bundleno = 6 (0x6), region = 141 }
 0x297   : > { %s1342_s28 = smov %s1336_s23 }
 0x298   : > { %s1343_s29 = smov %s1337_s15 }

</bundles_post_ra>
